<compile_context>
chip_gen: v7x
topology: tpu7x:2x2x1
jax: 0.10.0
libtpu: 0.0.40
codegen_flags: <defaults>
</compile_context>

<pallas_src>
import jax
import jax.numpy as jnp
from jax.experimental import pallas as pl
from jax.experimental.pallas import tpu as pltpu


_VMEM_LIMIT_BYTES = 32 * 1024 * 1024   # explicit; safe on v7x (64 MiB physical)
_BN_EPS = 1e-5
_MXU_MIN_CIN = 64                      # below this, the MXU is >95% zero padding


# ------------------------------- helpers ------------------------------------

def _round_up(x, m):
    return (x + m - 1) // m * m


def _pick_spatial_tile(cin, co4, hw, target=1024,
                       vmem_budget_bytes=16 * 1024 * 1024):
    """Largest spatial tile (multiple of 128) such that double-buffered
    input+output blocks of the heavier kernel stay well under the VMEM budget."""
    ts = _round_up(min(target, _round_up(hw, 128)), 128)
    bytes_per_lane = 2 * max(cin + co4, 2 * co4) * 4   # 2x double-buffered, f32
    while ts > 128 and bytes_per_lane * ts > vmem_budget_bytes:
        ts = max(128, _round_up(ts // 2, 128))
    return max(ts, 128)


# ----------------------------- Pallas kernels -------------------------------

def _make_convt_stats_kernel(cin, use_mxu):
    """ConvTranspose-as-matmul tile + partial BatchNorm statistics."""
    def kernel(x_ref, w_ref, y_ref, stats_ref):
        x = x_ref[0]        # (Cin, TS)      pixels on lanes
        w = w_ref[...]      # (4*Cout, Cin)
        if use_mxu:
            y = jnp.dot(w, x, preferred_element_type=jnp.float32)
        else:
            # Tiny contraction dim: sum of outer products on the VPU instead of
            # a heavily zero-padded MXU matmul (the op is memory bound anyway).
            y = w[:, 0:1] * x[0:1, :]
            for ci in range(1, cin):
                y = y + w[:, ci:ci + 1] * x[ci:ci + 1, :]
        y_ref[0] = y                                         # lane-dense store
        # Partial BN statistics for this tile (lane reductions on the XLU).
        s = jnp.sum(y, axis=1, keepdims=True)                # (4*Cout, 1)
        s2 = jnp.sum(y * y, axis=1, keepdims=True)           # (4*Cout, 1)
        stats_ref[0] = jnp.concatenate([s, s2], axis=1)      # (4*Cout, 2)
    return kernel


def _bn_lrelu_kernel(y_ref, scale_ref, shift_ref, o_ref):
    """Fused normalize (precomputed per-column scale/shift) + LeakyReLU(0.1)."""
    y = y_ref[0]                                   # (4*Cout, TS)
    z = y * scale_ref[...] + shift_ref[...]        # (4*Cout, 1) broadcast over lanes
    o_ref[0] = jnp.where(z >= 0, z, 0.1 * z)


# -------------------------------- wrapper ------------------------------------

def up_forward(x_nchw, w_convT, gamma, beta):
    """x_nchw: (N, Cin, H, W); w_convT: (Cin, Cout, 2, 2) (PyTorch layout);
    gamma, beta: (Cout,). Returns (N, Cout, 2H, 2W)."""
    N, Cin, H, W = x_nchw.shape
    Cin_w, Cout, KH, KW = w_convT.shape
    assert Cin_w == Cin and (KH, KW) == (2, 2)
    Co4 = 4 * Cout
    HW = H * W

    TS = _pick_spatial_tile(Cin, Co4, HW)
    HWp = _round_up(HW, TS)
    S = HWp // TS                                   # spatial tiles per sample

    # NCHW -> (N, Cin, H*W): free reshape, no transpose.
    x = x_nchw.astype(jnp.float32).reshape(N, Cin, HW)
    if HWp != HW:
        x = jnp.pad(x, ((0, 0), (0, 0), (0, HWp - HW)))   # zeros: stats unaffected

    # W[ci, co, a, b] -> W_t[(a, b, co), ci]  (LHS of y = W_t @ x)
    w_t = jnp.transpose(w_convT.astype(jnp.float32), (2, 3, 1, 0)).reshape(Co4, Cin)

    use_mxu = Cin >= _MXU_MIN_CIN
    # TODO(synk): at real FR-UNet sizes (Cin >= 64) feed x / w_t as bf16 (keep f32
    # accumulate + f32 BN/VPU math) to halve activation HBM traffic on v6e/v7x.

    params = pltpu.CompilerParams(
        dimension_semantics=("parallel", "parallel"),
        vmem_limit_bytes=_VMEM_LIMIT_BYTES,
    )

    # ---- Kernel 1: conv-transpose matmul + partial BN statistics ----
    y_flat, stats = pl.pallas_call(
        _make_convt_stats_kernel(Cin, use_mxu),
        out_shape=(
            jax.ShapeDtypeStruct((N, Co4, HWp), jnp.float32),
            jax.ShapeDtypeStruct((N * S, Co4, 2), jnp.float32),
        ),
        grid=(N, S),
        in_specs=[
            pl.BlockSpec((1, Cin, TS), lambda n, s: (n, 0, s)),
            pl.BlockSpec((Co4, Cin), lambda n, s: (0, 0)),
        ],
        out_specs=(
            pl.BlockSpec((1, Co4, TS), lambda n, s: (n, 0, s)),
            pl.BlockSpec((1, Co4, 2), lambda n, s: (n * S + s, 0, 0)),
        ),
        compiler_params=params,
    )(x, w_t)

    # ---- Finalize batch statistics (tiny: O(Cout) work, plain JAX) ----
    col = jnp.sum(stats, axis=0)                            # (Co4, 2)
    ch_sum = jnp.sum(col[:, 0].reshape(4, Cout), axis=0)    # group (a,b) per channel
    ch_sumsq = jnp.sum(col[:, 1].reshape(4, Cout), axis=0)
    count = float(N * (2 * H) * (2 * W))                    # true (unpadded) count
    mean = ch_sum / count
    var = ch_sumsq / count - mean * mean                    # biased, one-pass
    inv_std = jax.lax.rsqrt(var + _BN_EPS)
    scale_ch = gamma.astype(jnp.float32) * inv_std
    shift_ch = beta.astype(jnp.float32) - mean * scale_ch
    scale_col = jnp.tile(scale_ch, 4).reshape(Co4, 1)       # per-(a,b,co) column
    shift_col = jnp.tile(shift_ch, 4).reshape(Co4, 1)

    # ---- Kernel 2: tiled fused normalize + LeakyReLU(0.1) ----
    z_flat = pl.pallas_call(
        _bn_lrelu_kernel,
        out_shape=jax.ShapeDtypeStruct((N, Co4, HWp), jnp.float32),
        grid=(N, S),
        in_specs=[
            pl.BlockSpec((1, Co4, TS), lambda n, s: (n, 0, s)),
            pl.BlockSpec((Co4, 1), lambda n, s: (0, 0)),
            pl.BlockSpec((Co4, 1), lambda n, s: (0, 0)),
        ],
        out_specs=pl.BlockSpec((1, Co4, TS), lambda n, s: (n, 0, s)),
        compiler_params=params,
    )(y_flat, scale_col, shift_col)

    # ---- Pixel shuffle + NCHW output (single transpose, done once at the end) ----
    z = z_flat[:, :, :HW].reshape(N, 2, 2, Cout, H, W)      # [n, a, b, co, i, j]
    out = z.transpose(0, 3, 4, 1, 5, 2).reshape(N, Cout, 2 * H, 2 * W)
    return out


# ------------------------ pure-JAX reference (check) -------------------------

def up_forward_ref(x_nchw, w_convT, gamma, beta):
    N, Cin, H, W = x_nchw.shape
    _, Cout, _, _ = w_convT.shape
    x_nhwc = jnp.transpose(x_nchw, (0, 2, 3, 1)).astype(jnp.float32)
    # out[n, 2h+a, 2w+b, o] = sum_i x[n,h,w,i] * W[i,o,a,b]
    y = jnp.einsum("nhwi,ioab->nhawbo", x_nhwc, w_convT.astype(jnp.float32))
    y = y.reshape(N, 2 * H, 2 * W, Cout)
    mean = jnp.mean(y, axis=(0, 1, 2), keepdims=True)
    var = jnp.mean((y - mean) ** 2, axis=(0, 1, 2), keepdims=True)
    z = (y - mean) * jax.lax.rsqrt(var + _BN_EPS) * gamma.reshape(1, 1, 1, Cout) \
        + beta.reshape(1, 1, 1, Cout)
    z = jnp.where(z >= 0, z, 0.1 * z)
    return jnp.transpose(z, (0, 3, 1, 2))


# ---------------------------------- main -------------------------------------

if __name__ == "__main__":
    key = jax.random.PRNGKey(0)
    k1, k2, k3, k4 = jax.random.split(key, 4)

    N, Cin, H, W = 2, 4, 16, 16
    Cout = 8

    x = jax.random.normal(k1, (N, Cin, H, W), dtype=jnp.float32)
    # ConvTranspose2d weight: (in_channels, out_channels, kH, kW), no bias.
    w = 0.1 * jax.random.normal(k2, (Cin, Cout, 2, 2), dtype=jnp.float32)
    # BatchNorm2d affine params (deterministic, non-trivial).
    gamma = 1.0 + 0.1 * jax.random.normal(k3, (Cout,), dtype=jnp.float32)
    beta = 0.1 * jax.random.normal(k4, (Cout,), dtype=jnp.float32)

    up_fn = jax.jit(up_forward)
    out = jax.block_until_ready(up_fn(x, w, gamma, beta))
    ref = up_forward_ref(x, w, gamma, beta)

    assert out.shape == (N, Cout, 2 * H, 2 * W), out.shape
    max_err = float(jnp.max(jnp.abs(out - ref)))
    assert jnp.allclose(out, ref, rtol=1e-4, atol=1e-4), max_err
    print("KERNEL_OK")
</pallas_src>

<mosaic_0001>
module attributes {stable_mosaic.version = 11 : i64} {
  func.func @kernel(%arg0: i32, %arg1: i32, %arg2: memref<1x4x256xf32, #tpu.memory_space<vmem>>, %arg3: memref<32x4xf32, #tpu.memory_space<vmem>>, %arg4: memref<1x32x256xf32, #tpu.memory_space<vmem>>, %arg5: memref<1x32x2xf32, #tpu.memory_space<vmem>>) attributes {dimension_semantics = [#tpu.dimension_semantics<parallel>, #tpu.dimension_semantics<parallel>], iteration_bounds = array<i64: 2, 1>, scalar_prefetch = 0 : i64, scratch_operands = 0 : i64, tpu.core_type = #tpu.core_type<tc>, window_params = [{transform_indices = @transform_0, window_bounds = array<i64: 1, 4, 256>}, {pipeline_mode = #tpu.pipeline_mode<synchronous>, transform_indices = @transform_1, window_bounds = array<i64: 32, 4>}, {transform_indices = @transform_2, window_bounds = array<i64: 1, 32, 256>}, {transform_indices = @transform_3, window_bounds = array<i64: 1, 32, 2>}]} {
    %c0 = arith.constant 0 : index
    %c0_0 = arith.constant 0 : index
    %c0_1 = arith.constant 0 : index
    %0 = vector.load %arg2[%c0, %c0_0, %c0_1] : memref<1x4x256xf32, #tpu.memory_space<vmem>>, vector<1x4x256xf32>
    %1 = vector.shape_cast %0 : vector<1x4x256xf32> to vector<4x256xf32>
    %c0_2 = arith.constant 0 : index
    %c0_3 = arith.constant 0 : index
    %2 = vector.load %arg3[%c0_2, %c0_3] : memref<32x4xf32, #tpu.memory_space<vmem>>, vector<32x4xf32>
    %3 = vector.extract_strided_slice %2 {offsets = [0, 0], sizes = [32, 1], strides = [1, 1]} : vector<32x4xf32> to vector<32x1xf32>
    %4 = vector.extract_strided_slice %1 {offsets = [0, 0], sizes = [1, 256], strides = [1, 1]} : vector<4x256xf32> to vector<1x256xf32>
    %5 = vector.broadcast %3 : vector<32x1xf32> to vector<32x256xf32>
    %6 = vector.broadcast %4 : vector<1x256xf32> to vector<32x256xf32>
    %7 = arith.mulf %5, %6 : vector<32x256xf32>
    %8 = vector.extract_strided_slice %2 {offsets = [0, 1], sizes = [32, 1], strides = [1, 1]} : vector<32x4xf32> to vector<32x1xf32>
    %9 = vector.extract_strided_slice %1 {offsets = [1, 0], sizes = [1, 256], strides = [1, 1]} : vector<4x256xf32> to vector<1x256xf32>
    %10 = vector.broadcast %8 : vector<32x1xf32> to vector<32x256xf32>
    %11 = vector.broadcast %9 : vector<1x256xf32> to vector<32x256xf32>
    %12 = arith.mulf %10, %11 : vector<32x256xf32>
    %13 = arith.addf %7, %12 : vector<32x256xf32>
    %14 = vector.extract_strided_slice %2 {offsets = [0, 2], sizes = [32, 1], strides = [1, 1]} : vector<32x4xf32> to vector<32x1xf32>
    %15 = vector.extract_strided_slice %1 {offsets = [2, 0], sizes = [1, 256], strides = [1, 1]} : vector<4x256xf32> to vector<1x256xf32>
    %16 = vector.broadcast %14 : vector<32x1xf32> to vector<32x256xf32>
    %17 = vector.broadcast %15 : vector<1x256xf32> to vector<32x256xf32>
    %18 = arith.mulf %16, %17 : vector<32x256xf32>
    %19 = arith.addf %13, %18 : vector<32x256xf32>
    %20 = vector.extract_strided_slice %2 {offsets = [0, 3], sizes = [32, 1], strides = [1, 1]} : vector<32x4xf32> to vector<32x1xf32>
    %21 = vector.extract_strided_slice %1 {offsets = [3, 0], sizes = [1, 256], strides = [1, 1]} : vector<4x256xf32> to vector<1x256xf32>
    %22 = vector.broadcast %20 : vector<32x1xf32> to vector<32x256xf32>
    %23 = vector.broadcast %21 : vector<1x256xf32> to vector<32x256xf32>
    %24 = arith.mulf %22, %23 : vector<32x256xf32>
    %25 = arith.addf %19, %24 : vector<32x256xf32>
    %c0_4 = arith.constant 0 : index
    %c0_5 = arith.constant 0 : index
    %c0_6 = arith.constant 0 : index
    %26 = vector.load %arg4[%c0_4, %c0_5, %c0_6] : memref<1x32x256xf32, #tpu.memory_space<vmem>>, vector<1x32x256xf32>
    %27 = vector.shape_cast %26 : vector<1x32x256xf32> to vector<32x256xf32>
    %28 = vector.shape_cast %25 : vector<32x256xf32> to vector<1x32x256xf32>
    tpu.vector_store %arg4[%c0_4, %c0_5, %c0_6], %28 {strides = array<i32>} : memref<1x32x256xf32, #tpu.memory_space<vmem>>, vector<1x32x256xf32>,
    %cst = arith.constant dense<0.000000e+00> : vector<32xf32>
    %29 = vector.multi_reduction <add>, %25, %cst [1] : vector<32x256xf32> to vector<32xf32>
    %30 = vector.shape_cast %29 : vector<32xf32> to vector<32x1xf32>
    %31 = arith.mulf %25, %25 : vector<32x256xf32>
    %cst_7 = arith.constant dense<0.000000e+00> : vector<32xf32>
    %32 = vector.multi_reduction <add>, %31, %cst_7 [1] : vector<32x256xf32> to vector<32xf32>
    %33 = vector.shape_cast %32 : vector<32xf32> to vector<32x1xf32>
    %34 = tpu.concatenate %30, %33 in 1 : vector<32x1xf32>, vector<32x1xf32> -> vector<32x2xf32>
    %c0_8 = arith.constant 0 : index
    %c0_9 = arith.constant 0 : index
    %c0_10 = arith.constant 0 : index
    %35 = vector.load %arg5[%c0_8, %c0_9, %c0_10] : memref<1x32x2xf32, #tpu.memory_space<vmem>>, vector<1x32x2xf32>
    %36 = vector.shape_cast %35 : vector<1x32x2xf32> to vector<32x2xf32>
    %37 = vector.shape_cast %34 : vector<32x2xf32> to vector<1x32x2xf32>
    tpu.vector_store %arg5[%c0_8, %c0_9, %c0_10], %37 {strides = array<i32>} : memref<1x32x2xf32, #tpu.memory_space<vmem>>, vector<1x32x2xf32>,
    return
  }
  func.func @transform_0(%arg0: i32, %arg1: i32) -> (i32, i32, i32) {
    %c0_i32 = arith.constant 0 : i32
    %c0_i32_0 = arith.constant 0 : i32
    return %arg0, %c0_i32, %arg1 : i32, i32, i32
  }
  func.func @transform_1(%arg0: i32, %arg1: i32) -> (i32, i32) {
    %c0_i32 = arith.constant 0 : i32
    %c0_i32_0 = arith.constant 0 : i32
    %c0_i32_1 = arith.constant 0 : i32
    return %c0_i32, %c0_i32_0 : i32, i32
  }
  func.func @transform_2(%arg0: i32, %arg1: i32) -> (i32, i32, i32) {
    %c0_i32 = arith.constant 0 : i32
    %c0_i32_0 = arith.constant 0 : i32
    return %arg0, %c0_i32, %arg1 : i32, i32, i32
  }
  func.func @transform_3(%arg0: i32, %arg1: i32) -> (i32, i32, i32) {
    %c1_i32 = arith.constant 1 : i32
    %0 = arith.muli %arg0, %c1_i32 : i32
    %1 = arith.addi %0, %arg1 : i32
    %c0_i32 = arith.constant 0 : i32
    %c0_i32_0 = arith.constant 0 : i32
    %c0_i32_1 = arith.constant 0 : i32
    return %1, %c0_i32, %c0_i32_0 : i32, i32, i32
  }
}

module attributes {stable_mosaic.version = 11 : i64} {
  func.func @_bn_lrelu_kernel(%arg0: i32, %arg1: i32, %arg2: memref<1x32x256xf32, #tpu.memory_space<vmem>>, %arg3: memref<32x1xf32, #tpu.memory_space<vmem>>, %arg4: memref<32x1xf32, #tpu.memory_space<vmem>>, %arg5: memref<1x32x256xf32, #tpu.memory_space<vmem>>) attributes {dimension_semantics = [#tpu.dimension_semantics<parallel>, #tpu.dimension_semantics<parallel>], iteration_bounds = array<i64: 2, 1>, scalar_prefetch = 0 : i64, scratch_operands = 0 : i64, tpu.core_type = #tpu.core_type<tc>, window_params = [{transform_indices = @transform_0, window_bounds = array<i64: 1, 32, 256>}, {pipeline_mode = #tpu.pipeline_mode<synchronous>, transform_indices = @transform_1, window_bounds = array<i64: 32, 1>}, {pipeline_mode = #tpu.pipeline_mode<synchronous>, transform_indices = @transform_2, window_bounds = array<i64: 32, 1>}, {transform_indices = @transform_3, window_bounds = array<i64: 1, 32, 256>}]} {
    %c0 = arith.constant 0 : index
    %c0_0 = arith.constant 0 : index
    %c0_1 = arith.constant 0 : index
    %0 = vector.load %arg2[%c0, %c0_0, %c0_1] : memref<1x32x256xf32, #tpu.memory_space<vmem>>, vector<1x32x256xf32>
    %1 = vector.shape_cast %0 : vector<1x32x256xf32> to vector<32x256xf32>
    %c0_2 = arith.constant 0 : index
    %c0_3 = arith.constant 0 : index
    %2 = vector.load %arg3[%c0_2, %c0_3] : memref<32x1xf32, #tpu.memory_space<vmem>>, vector<32x1xf32>
    %3 = vector.broadcast %2 : vector<32x1xf32> to vector<32x256xf32>
    %4 = arith.mulf %1, %3 : vector<32x256xf32>
    %c0_4 = arith.constant 0 : index
    %c0_5 = arith.constant 0 : index
    %5 = vector.load %arg4[%c0_4, %c0_5] : memref<32x1xf32, #tpu.memory_space<vmem>>, vector<32x1xf32>
    %6 = vector.broadcast %5 : vector<32x1xf32> to vector<32x256xf32>
    %7 = arith.addf %4, %6 : vector<32x256xf32>
    %cst = arith.constant 0.000000e+00 : f32
    %8 = vector.broadcast %cst : f32 to vector<32x256xf32>
    %9 = arith.cmpf oge, %7, %8 : vector<32x256xf32>
    %cst_6 = arith.constant 1.000000e-01 : f32
    %10 = vector.broadcast %cst_6 : f32 to vector<32x256xf32>
    %11 = arith.mulf %10, %7 : vector<32x256xf32>
    %12 = arith.select %9, %7, %11 : vector<32x256xi1>, vector<32x256xf32>
    %c0_7 = arith.constant 0 : index
    %c0_8 = arith.constant 0 : index
    %c0_9 = arith.constant 0 : index
    %13 = vector.load %arg5[%c0_7, %c0_8, %c0_9] : memref<1x32x256xf32, #tpu.memory_space<vmem>>, vector<1x32x256xf32>
    %14 = vector.shape_cast %13 : vector<1x32x256xf32> to vector<32x256xf32>
    %15 = vector.shape_cast %12 : vector<32x256xf32> to vector<1x32x256xf32>
    tpu.vector_store %arg5[%c0_7, %c0_8, %c0_9], %15 {strides = array<i32>} : memref<1x32x256xf32, #tpu.memory_space<vmem>>, vector<1x32x256xf32>,
    return
  }
  func.func @transform_0(%arg0: i32, %arg1: i32) -> (i32, i32, i32) {
    %c0_i32 = arith.constant 0 : i32
    %c0_i32_0 = arith.constant 0 : i32
    return %arg0, %c0_i32, %arg1 : i32, i32, i32
  }
  func.func @transform_1(%arg0: i32, %arg1: i32) -> (i32, i32) {
    %c0_i32 = arith.constant 0 : i32
    %c0_i32_0 = arith.constant 0 : i32
    %c0_i32_1 = arith.constant 0 : i32
    return %c0_i32, %c0_i32_0 : i32, i32
  }
  func.func @transform_2(%arg0: i32, %arg1: i32) -> (i32, i32) {
    %c0_i32 = arith.constant 0 : i32
    %c0_i32_0 = arith.constant 0 : i32
    %c0_i32_1 = arith.constant 0 : i32
    return %c0_i32, %c0_i32_0 : i32, i32
  }
  func.func @transform_3(%arg0: i32, %arg1: i32) -> (i32, i32, i32) {
    %c0_i32 = arith.constant 0 : i32
    %c0_i32_0 = arith.constant 0 : i32
    return %arg0, %c0_i32, %arg1 : i32, i32, i32
  }
}

</mosaic_0001>

<bundles_post_ra>
// kernel: squeeze.2
= control target key start
LH: loop header
LB: loop body
LE: loop exit
PB: predicated region body
PF: predicated region fallthrough
CT: control target
= control target key end

     0   :  { %s37_s8 = smov 104   ;;  %vm7_vm0 = vcmask 64512   ;;  %s38_s9 = smov 112   ;;  %s55_s0 = inlined_call_operand.vmem [shape: f32[32], index: 0, kind: input, shape index: {}]   ;;  %s56_s1 = inlined_call_operand.vmem [shape: f32[4,8], index: 1, kind: output, shape index: {}]  }
   0x1   :  { %v4_v0 = vld [vmem:[%s55_s0] sm:$0x1]  ;;  %s36_s0 = smov 120  }
   0x2   :  { %5 = vst [vmem:[#allocation1] sm:$0x1] %v4_v0 }
   0x9   :  { %v9_v1 = vld [vmem:[#allocation1] sm:$0x1]  }
   0xa   :  { %v21_v2 = vld [vmem:[#allocation1] sm:$0x1]   ;;  %10 = vrot.lane.b32.xlu0 %v9_v1, %s36_s0 }
   0xb   :  { %22 = vrot.lane.b32.xlu1 %v21_v2, %s37_s8  ;;  %v6_v3 = vld [vmem:[#allocation1] sm:$0x1]  }
   0xc   :  { %v15_v4 = vld [vmem:[#allocation1] sm:$0x1]   ;;  %8 = vst.msk [vmem:[#allocation0] sm:$0x1] %vm7_vm0, %v6_v3  }
   0xe   :  { %16 = vrot.lane.b32.xlu0 %v15_v4, %s38_s9 }
  0x7c   :  { %v11_v5 = vpop.permute.xlu0 %10  }
  0x7d   :  { %v23_v6 = vpop.permute.xlu1 %22   ;;  %14 = vst.msk [vmem:[#allocation0 + $0x1] sm:$0x1] %vm7_vm0, %v11_v5  }
  0x7e   :  { %26 = vst.msk [vmem:[#allocation0 + $0x3] sm:$0x1] %vm7_vm0, %v23_v6  }
  0x80   :  { %v17_v7 = vpop.permute.xlu0 %16  }
  0x81   :  { %20 = vst.msk [vmem:[#allocation0 + $0x2] sm:$0x1] %vm7_vm0, %v17_v7  }
  0x88   :  { %v30_v8 = vld [vmem:[#allocation0] sm:$0xf] }
  0x89   :  { %32 = vst [vmem:[%s56_s1] sm:$0xf] %v30_v8 }

// kernel: tile.18
= control target key start
LH: loop header
LB: loop body
LE: loop exit
PB: predicated region body
PF: predicated region fallthrough
CT: control target
= control target key end

     0   :  { %s22_s0 = inlined_call_operand.vmem [shape: f32[8], index: 0, kind: input, shape index: {}]   ;;  %s23_s1 = inlined_call_operand.vmem [shape: f32[4,8], index: 1, kind: output, shape index: {}]  }
   0x1   :  { %v4_v0 = vld [vmem:[%s22_s0] ss:$0 sm:$0xff] }
   0x2   :  { %5 = vst [vmem:[%s23_s1] sm:$0xf] %v4_v0 }

// kernel: tile.0
= control target key start
LH: loop header
LB: loop body
LE: loop exit
PB: predicated region body
PF: predicated region fallthrough
CT: control target
= control target key end

     0   :  { %s66_s8 = smov 125   ;;  %vm7_vm0 = vcmask 7168   ;;  %s67_s11 = smov 126   ;;  %s117_s0 = inlined_call_operand.vmem [shape: f32[4,8], index: 0, kind: input, shape index: {}]   ;;  %s118_s1 = inlined_call_operand.vmem [shape: f32[32,1], index: 1, kind: output, shape index: {}]  }
   0x1   :  { %v4_v0 = vld [vmem:[%s117_s0] sm:$0xf]  ;;  %s65_s0 = smov 127   ;;  %s68_s12 = smov 124  }
   0x2   :  { %5 = vst [vmem:[#allocation0] sm:$0xf] %v4_v0  ;;  %s69_s13 = smov 123   ;;  %s70_s14 = smov 122  }
   0x3   :  { %s71_s15 = smov 121  }
   0x9   :  { %v9_v1 = vld [vmem:[#allocation0] sm:$0xf]  }
   0xa   :  { %v21_v2 = vld [vmem:[#allocation0] sm:$0xf]   ;;  %10 = vrot.lane.b32.xlu0 %v9_v1, %s65_s0 }
   0xb   :  { %22 = vrot.lane.b32.xlu1 %v21_v2, %s66_s8  ;;  %v15_v3 = vld [vmem:[#allocation0] sm:$0xf]  }
   0xc   :  { %v27_v4 = vld [vmem:[#allocation0] sm:$0xf]  }
   0xd   :  { %v6_v5 = vld [vmem:[#allocation0] sm:$0xf]  }
   0xe   :  { %8 = vst.msk [vmem:[%s118_s1] ss:$8 sm:$0xf] %vm7_vm0, %v6_v5   ;;  %16 = vrot.lane.b32.xlu0 %v15_v3, %s67_s11  ;;  %v33_v6 = vld [vmem:[#allocation0] sm:$0xf]  }
   0xf   :  { %28 = vrot.lane.b32.xlu1 %v27_v4, %s68_s12  ;;  %v39_v7 = vld [vmem:[#allocation0] sm:$0xf]  }
  0x10   :  { %v45_v8 = vld [vmem:[#allocation0] sm:$0xf]  }
  0x12   :  { %34 = vrot.lane.b32.xlu0 %v33_v6, %s69_s13 }
  0x13   :  { %40 = vrot.lane.b32.xlu1 %v39_v7, %s70_s14 }
  0x16   :  { %46 = vrot.lane.b32.xlu0 %v45_v8, %s71_s15 }
  0x7c   :  { %v11_v9 = vpop.permute.xlu0 %10  }
  0x7d   :  { %v23_v10 = vpop.permute.xlu1 %22   ;;  %51 = vst.msk [vmem:[%s118_s1 + $0x1] ss:$8 sm:$0xf] %vm7_vm0, %v11_v9  }
  0x7e   :  { %53 = vst.msk [vmem:[%s118_s1 + $0x3] ss:$8 sm:$0xf] %vm7_vm0, %v23_v10  }
  0x80   :  { %v17_v11 = vpop.permute.xlu0 %16  }
  0x81   :  { %v29_v12 = vpop.permute.xlu1 %28   ;;  %52 = vst.msk [vmem:[%s118_s1 + $0x2] ss:$8 sm:$0xf] %vm7_vm0, %v17_v11  }
  0x82   :  { %54 = vst.msk [vmem:[%s118_s1 + $0x4] ss:$8 sm:$0xf] %vm7_vm0, %v29_v12  }
  0x84   :  { %v35_v13 = vpop.permute.xlu0 %34  }
  0x85   :  { %v41_v14 = vpop.permute.xlu1 %40   ;;  %55 = vst.msk [vmem:[%s118_s1 + $0x5] ss:$8 sm:$0xf] %vm7_vm0, %v35_v13  }
  0x86   :  { %56 = vst.msk [vmem:[%s118_s1 + $0x6] ss:$8 sm:$0xf] %vm7_vm0, %v41_v14  }
  0x88   :  { %v47_v15 = vpop.permute.xlu0 %46  }
  0x89   :  { %57 = vst.msk [vmem:[%s118_s1 + $0x7] ss:$8 sm:$0xf] %vm7_vm0, %v47_v15  }

// kernel: up_forward.2
= control target key start
LH: loop header
LB: loop body
LE: loop exit
PB: predicated region body
PF: predicated region fallthrough
CT: control target
= control target key end

     0   :  { %s703_s12 = smov 0   ;;  %s705_s13 = smov 0   ;;  %s786_s0 = inlined_call_operand.vmem [shape: f32[2,4,256], index: 0, kind: input, shape index: {}]   ;;  %s787_s1 = inlined_call_operand.vmem [shape: f32[32,4], index: 1, kind: input, shape index: {}]   ;;  %s788_s2 = inlined_call_operand.vmem [shape: f32[2,32,256], index: 2, kind: output, shape index: {0}]   ;;  %s789_s3 = inlined_call_operand.vmem [shape: f32[2,32,2], index: 3, kind: output, shape index: {1}]  }
   0x1   :  { %s707_s14 = smov 0  }
   0x2 LB: > { %s26_s15 = sadd.s32 1, %s673_s13  ;;  %p607_p0 = scmp.ge.s32.totalorder %s677_s14, 1  ;;  %s677_s14 = sphi %s707_s14, %s14_s14   ;;  %s673_s13 = sphi %s705_s13, %s791_s13   ;;  %s669_s12 = sphi %s703_s12, %s790_s12  }
   0x3   : > { %p28_p1 = scmp.ge.s32.totalorder %s26_s15, 2  ;;  %p163_p2 = scmp.lt.s32.totalorder %s677_s14, 3 }
   0x5   : > { %s793_s15 = smov (%p28_p1, %s26_s15), 0  ;;  %p164_p3 = pnand %p607_p0, %p163_p2 }
   0x6   : > { %v231_v0 = vld [vmem:[%s787_s1 + $0x10] sm:$0xff] (!%p164_p3)  ;;  %v229_v1 = vld [vmem:[%s787_s1] sm:$0xff] (!%p164_p3)  ;;  %v679_v2 = vmov (!%p164_p3), 0   ;;  %v232_v3 = vld [vmem:[%s787_s1 + $0x18] sm:$0xff] (!%p164_p3)  ;;  %v680_v5 = vmov (!%p164_p3), 1   ;;  %v681_v6 = vmov (!%p164_p3), 2   ;;  %v254_v8 = vlaneseq (!%p164_p3) }
   0x7   : > { %167 = sbr.rel (%p164_p3) target bundleno = 329 (0x149), region = 28  ;;  %648 = vset.pattern.permute.xlu1 (!%p164_p3), %v679_v2  ;;  %647 = vset.pattern.permute.xlu0 (!%p164_p3), %v679_v2  ;;  %v230_v4 = vld [vmem:[%s787_s1 + $0x8] sm:$0xff] (!%p164_p3)  ;;  %v682_v7 = vmov (!%p164_p3), 3   ;;  %p202_p4 = scmp.lt.s32.totalorder (!%p164_p3), %s669_s12, 1  ;;  %vm470_vm0 = vcmask (!%p164_p3), 7168   ;;  %vm475_vm1 = vcmask (!%p164_p3), 15360  }
   0x8   : > { %245 = vperm.xlu1 (!%p164_p3), %648, %v231_v0   ;;  %235 = vperm.xlu0 (!%p164_p3), %647, %v229_v1   ;;  %v255_v11 = vshrl.u32 (!%p164_p3), %v254_v8, 7 }
   0xa   : > { %v298_v14 = vsub.s32 (!%p164_p3), 1, %v255_v11  ;;  %v302_v15 = vsub.s32 (!%p164_p3), 5, %v255_v11  ;;  %v256_v16 = vsub.s32 (!%p164_p3), 0, %v255_v11  ;;  %v260_v17 = vsub.s32 (!%p164_p3), 4, %v255_v11 }
   0xb   : > { %v348_v19 = vsub.s32 (!%p164_p3), 2, %v255_v11  ;;  %v352_v20 = vsub.s32 (!%p164_p3), 6, %v255_v11  ;;  %v398_v29 = vsub.s32 (!%p164_p3), 3, %v255_v11  ;;  %v402_v30 = vsub.s32 (!%p164_p3), 7, %v255_v11 }
   0xc   : > { %250 = vperm.xlu1 (!%p164_p3), %648, %v232_v3   ;;  %240 = vperm.xlu0 (!%p164_p3), %647, %v230_v4  }
   0xe   : > { %s795_s12 = smov (!%p202_p4, %s669_s12), 1 }
   0xf   : > { %s616_s24 = sshll.u32 %s795_s12, 3  ;;  %s617_s28 = sshll.u32 %s795_s12, 6 }
  0x10   : > { %650 = vset.pattern.permute.xlu1 %v680_v5  ;;  %649 = vset.pattern.permute.xlu0 %v680_v5  ;;  %s209_s27 = scalar_lea.vmem %s786_s0, %s616_s24  ;;  %s755_s4 = scalar_lea.vmem %s788_s2, %s617_s28 }
  0x11   : > { %285 = vperm.xlu1 %650, %v230_v4   ;;  %281 = vperm.xlu0 %649, %v229_v1   ;;  %v228_v18 = vld [vmem:[%s209_s27] sm:$0xff]  ;;  %s618_s5 = sshll.u32 %s795_s12, 5 }
  0x12   : > { %v299_v23 = vrot.slane %v228_v18, %v298_v14  ;;  %v303_v24 = vrot.slane %v228_v18, %v302_v15  ;;  %v257_v25 = vrot.slane %v228_v18, %v256_v16  ;;  %v261_v26 = vrot.slane %v228_v18, %v260_v17  ;;  %s226_s8 = scalar_lea.vmem %s789_s3, %s618_s5 }
  0x13   : > { %v349_v27 = vrot.slane %v228_v18, %v348_v19  ;;  %v353_v28 = vrot.slane %v228_v18, %v352_v20  ;;  %v399_v39 = vrot.slane %v228_v18, %v398_v29  ;;  %v403_v40 = vrot.slane %v228_v18, %v402_v30 }
  0x14   : > { %v309_v33 = vrot.slane %v299_v23, %v298_v14  ;;  %v313_v34 = vrot.slane %v303_v24, %v298_v14  ;;  %v267_v35 = vrot.slane %v257_v25, %v256_v16  ;;  %v271_v36 = vrot.slane %v261_v26, %v256_v16 }
  0x15   : > { %289 = vperm.xlu1 %650, %v231_v0   ;;  %293 = vperm.xlu0 %649, %v232_v3   ;;  %v359_v37 = vrot.slane %v349_v27, %v348_v19  ;;  %v363_v38 = vrot.slane %v353_v28, %v348_v19  ;;  %v745_v49 = vrot.slane %v399_v39, %v398_v29 }
  0x16   : > { %v747_v50 = vrot.slane %v403_v40, %v398_v29 }
  0x19   : > { %651 = vset.pattern.permute.xlu1 %v681_v6  ;;  %652 = vset.pattern.permute.xlu0 %v681_v6 }
  0x1a   : > { %331 = vperm.xlu1 %651, %v229_v1   ;;  %335 = vperm.xlu0 %652, %v230_v4  }
  0x1e   : > { %339 = vperm.xlu1 %651, %v231_v0   ;;  %653 = vset.pattern.permute.xlu0 %v682_v7 }
  0x1f   : > { %381 = vperm.xlu0 %653, %v229_v1  }
  0x22   : > { %343 = vperm.xlu1 %651, %v232_v3  }
  0x23   : > { %393 = vperm.xlu0 %653, %v232_v3  }
  0x26   : > { %654 = vset.pattern.permute.xlu1 %v682_v7 }
  0x27   : > { %385 = vperm.xlu1 %654, %v230_v4  }
  0x2b   : > { %389 = vperm.xlu1 %654, %v231_v0  }
  0x87   : > { %v739_v9 = vpop.permute.xlu1 %245  ;;  %v236_v10 = vpop.permute.xlu0 %235 }
  0x88   : > { %v272_v41 = vmul.f32 %v267_v35, %v236_v10  ;;  %v273_v42 = vmul.f32 %v271_v36, %v236_v10 }
  0x8b   : > { %v251_v12 = vpop.permute.xlu1 %250  ;;  %v241_v13 = vpop.permute.xlu0 %240 }
  0x8c   : > { %v278_v55 = vmul.f32 %v267_v35, %v251_v12  ;;  %v279_v62 = vmul.f32 %v271_v36, %v251_v12  ;;  %v274_v63 = vmul.f32 %v267_v35, %v241_v13  ;;  %v275_v0 = vmul.f32 %v271_v36, %v241_v13 }
  0x90   : > { %v286_v21 = vpop.permute.xlu1 %285  ;;  %v282_v22 = vpop.permute.xlu0 %281 }
  0x91   : > { %v314_v43 = vmul.f32 %v309_v33, %v282_v22  ;;  %v315_v44 = vmul.f32 %v313_v34, %v282_v22  ;;  %v316_v1 = vmul.f32 %v309_v33, %v286_v21  ;;  %v317_v2 = vmul.f32 %v313_v34, %v286_v21 }
  0x92   : > { %v276_v21 = vmul.f32 %v267_v35, %v739_v9  ;;  %v277_v22 = vmul.f32 %v271_v36, %v739_v9 }
  0x93   : > { %v322_v51 = vadd.f32 %v314_v43, %v272_v41  ;;  %v323_v52 = vadd.f32 %v315_v44, %v273_v42  ;;  %v324_v23 = vadd.f32 %v316_v1, %v274_v63  ;;  %v325_v24 = vadd.f32 %v317_v2, %v275_v0 }
  0x94   : > { %v290_v31 = vpop.permute.xlu1 %289  ;;  %v294_v32 = vpop.permute.xlu0 %293 }
  0x95   : > { %v320_v53 = vmul.f32 %v309_v33, %v294_v32  ;;  %v321_v56 = vmul.f32 %v313_v34, %v294_v32  ;;  %v318_v17 = vmul.f32 %v309_v33, %v290_v31  ;;  %v319_v18 = vmul.f32 %v313_v34, %v290_v31 }
  0x97   : > { %v328_v3 = vadd.f32 %v320_v53, %v278_v55  ;;  %v329_v7 = vadd.f32 %v321_v56, %v279_v62  ;;  %v326_v34 = vadd.f32 %v318_v17, %v276_v21  ;;  %v327_v35 = vadd.f32 %v319_v18, %v277_v22 }
  0x99   : > { %v332_v45 = vpop.permute.xlu1 %331  ;;  %v336_v46 = vpop.permute.xlu0 %335 }
  0x9a   : > { %v364_v47 = vmul.f32 %v359_v37, %v332_v45  ;;  %v365_v48 = vmul.f32 %v363_v38, %v332_v45  ;;  %v366_v8 = vmul.f32 %v359_v37, %v336_v46  ;;  %v367_v14 = vmul.f32 %v363_v38, %v336_v46 }
  0x9c   : > { %v372_v58 = vadd.f32 %v364_v47, %v322_v51  ;;  %v373_v59 = vadd.f32 %v365_v48, %v323_v52  ;;  %v374_v30 = vadd.f32 %v366_v8, %v324_v23  ;;  %v375_v31 = vadd.f32 %v367_v14, %v325_v24 }
  0x9d   : > { %v340_v54 = vpop.permute.xlu1 %339 }
  0x9e   : > { %v382_v57 = vpop.permute.xlu0 %381  ;;  %v368_v25 = vmul.f32 %v359_v37, %v340_v54  ;;  %v369_v26 = vmul.f32 %v363_v38, %v340_v54 }
  0x9f   : > { %v414_v60 = vmul.f32 %v745_v49, %v382_v57  ;;  %v415_v61 = vmul.f32 %v747_v50, %v382_v57 }
  0xa1   : > { %v422_v4 = vadd.f32 %v414_v60, %v372_v58  ;;  %v423_v5 = vadd.f32 %v415_v61, %v373_v59  ;;  %v344_v6 = vpop.permute.xlu1 %343 }
  0xa2   : > { %v370_v10 = vmul.f32 %v359_v37, %v344_v6  ;;  %v371_v11 = vmul.f32 %v363_v38, %v344_v6  ;;  %v394_v12 = vpop.permute.xlu0 %393  ;;  %v376_v37 = vadd.f32 %v368_v25, %v326_v34  ;;  %v377_v38 = vadd.f32 %v369_v26, %v327_v35 }
  0xa3   : > { %430 = vst [vmem:[%s755_s4] sm:$0xff] %v422_v4  ;;  %431 = vst [vmem:[%s755_s4 + $0x8] sm:$0xff] %v423_v5  ;;  %v420_v13 = vmul.f32 %v745_v49, %v394_v12  ;;  %v421_v15 = vmul.f32 %v747_v50, %v394_v12  ;;  %v438_v16 = vadd.f32 %v423_v5, %v422_v4 }
  0xa4   : > { %v378_v19 = vadd.f32 %v370_v10, %v328_v3  ;;  %v379_v20 = vadd.f32 %v371_v11, %v329_v7  ;;  %v450_v54 = vmul.f32 %v422_v4, %v422_v4  ;;  %v451_v55 = vmul.f32 %v423_v5, %v423_v5 }
  0xa5   : > { %439 = vadd.xlane.f32.xlu1 %v438_v16 }
  0xa6   : > { %v428_v27 = vadd.f32 %v420_v13, %v378_v19  ;;  %v429_v28 = vadd.f32 %v421_v15, %v379_v20  ;;  %v386_v29 = vpop.permute.xlu1 %385  ;;  %v458_v56 = vadd.f32 %v451_v55, %v450_v54 }
  0xa7   : > { %v416_v32 = vmul.f32 %v745_v49, %v386_v29  ;;  %v417_v33 = vmul.f32 %v747_v50, %v386_v29 }
  0xa8   : > { %436 = vst [vmem:[%s755_s4 + $0x30] sm:$0xff] %v428_v27  ;;  %437 = vst [vmem:[%s755_s4 + $0x38] sm:$0xff] %v429_v28  ;;  %v447_v9 = vadd.f32 %v429_v28, %v428_v27  ;;  %v456_v51 = vmul.f32 %v428_v27, %v428_v27  ;;  %v457_v52 = vmul.f32 %v429_v28, %v429_v28 }
  0xa9   : > { %v424_v36 = vadd.f32 %v416_v32, %v374_v30  ;;  %v425_v39 = vadd.f32 %v417_v33, %v375_v31 }
  0xaa   : > { %v390_v40 = vpop.permute.xlu1 %389  ;;  %448 = vadd.xlane.f32.xlu1 %v447_v9 }
  0xab   : > { %432 = vst [vmem:[%s755_s4 + $0x10] sm:$0xff] %v424_v36  ;;  %433 = vst [vmem:[%s755_s4 + $0x18] sm:$0xff] %v425_v39  ;;  %v418_v41 = vmul.f32 %v745_v49, %v390_v40  ;;  %v419_v42 = vmul.f32 %v747_v50, %v390_v40  ;;  %v441_v43 = vadd.f32 %v425_v39, %v424_v36 }
  0xac   : > { %v452_v44 = vmul.f32 %v424_v36, %v424_v36  ;;  %v453_v45 = vmul.f32 %v425_v39, %v425_v39  ;;  %v467_v49 = vadd.f32 %v457_v52, %v456_v51 }
  0xad   : > { %v426_v46 = vadd.f32 %v418_v41, %v376_v37  ;;  %v427_v47 = vadd.f32 %v419_v42, %v377_v38  ;;  %442 = vadd.xlane.f32.xlu0 %v441_v43 }
  0xae   : > { %v461_v48 = vadd.f32 %v453_v45, %v452_v44 }
  0xaf   : > { %434 = vst [vmem:[%s755_s4 + $0x20] sm:$0xff] %v426_v46  ;;  %435 = vst [vmem:[%s755_s4 + $0x28] sm:$0xff] %v427_v47  ;;  %v444_v53 = vadd.f32 %v427_v47, %v426_v46  ;;  %v454_v50 = vmul.f32 %v426_v46, %v426_v46  ;;  %v455_v57 = vmul.f32 %v427_v47, %v427_v47 }
  0xb0   : > { %462 = vadd.xlane.f32.xlu1 %v461_v48 }
  0xb1   : > { %445 = vadd.xlane.f32.xlu0 %v444_v53  ;;  %v464_v58 = vadd.f32 %v455_v57, %v454_v50 }
  0xb4   : > { %468 = vadd.xlane.f32.xlu1 %v467_v49 }
  0xb5   : > { %459 = vadd.xlane.f32.xlu0 %v458_v56 }
  0xb9   : > { %465 = vadd.xlane.f32.xlu0 %v464_v58 }
 0x132   : > { %v440_v59 = vpop.xlane.xlu1 %439 }
 0x137   : > { %v449_v60 = vpop.xlane.xlu1 %448 }
 0x13a   : > { %v443_v61 = vpop.xlane.xlu0 %442 }
 0x13d   : > { %v463_v62 = vpop.xlane.xlu1 %462 }
 0x13e   : > { %v472_v63 = vsel %vm470_vm0, %v443_v61, %v463_v62  ;;  %v446_v0 = vpop.xlane.xlu0 %445 }
 0x13f   : > { %477 = vst.msk [vmem:[%s226_s8 + $0x8] sm:$0xff] %vm475_vm1, %v472_v63 }
 0x141   : > { %v469_v1 = vpop.xlane.xlu1 %468 }
 0x142   : > { %v474_v2 = vsel %vm470_vm0, %v449_v60, %v469_v1  ;;  %v460_v3 = vpop.xlane.xlu0 %459 }
 0x143   : > { %479 = vst.msk [vmem:[%s226_s8 + $0x18] sm:$0xff] %vm475_vm1, %v474_v2  ;;  %v471_v4 = vsel %vm470_vm0, %v440_v59, %v460_v3 }
 0x144   : > { %476 = vst.msk [vmem:[%s226_s8] sm:$0xff] %vm475_vm1, %v471_v4 }
 0x146   : > { %v466_v5 = vpop.xlane.xlu0 %465 }
 0x147   : > { %v473_v6 = vsel %vm470_vm0, %v446_v0, %v466_v5 }
 0x148   : > { %478 = vst.msk [vmem:[%s226_s8 + $0x10] sm:$0xff] %vm475_vm1, %v473_v6 }
 0x149 PF: > { %s14_s14 = sadd.s32 1, %s677_s14   ;;  %s790_s12 = smov %s673_s13 }
 0x14a   : > { %p11_p5 = scmp.ge.s32.totalorder %s14_s14, 4   ;;  %s791_s13 = smov %s793_s15 }
 0x14c   :  { %13 = sbr.rel (!%p11_p5) target bundleno = 2 (0x2), region = 70 }

// kernel: up_forward.3
= control target key start
LH: loop header
LB: loop body
LE: loop exit
PB: predicated region body
PF: predicated region fallthrough
CT: control target
= control target key end

     0   :  { %s486_s12 = smov 0   ;;  %s488_s13 = smov 0   ;;  %s560_s0 = inlined_call_operand.vmem [shape: f32[2,32,256], index: 0, kind: input, shape index: {}]   ;;  %s561_s1 = inlined_call_operand.vmem [shape: f32[32,1], index: 1, kind: input, shape index: {}]   ;;  %s562_s2 = inlined_call_operand.vmem [shape: f32[32,1], index: 2, kind: input, shape index: {}]   ;;  %s563_s3 = inlined_call_operand.vmem [shape: f32[2,32,256], index: 3, kind: output, shape index: {}]  }
   0x1   :  { %s490_s14 = smov 0  }
   0x2 LB: > { %s25_s15 = sadd.s32 1, %s459_s13  ;;  %p405_p0 = scmp.ge.s32.totalorder %s463_s14, 1  ;;  %s463_s14 = sphi %s490_s14, %s13_s14   ;;  %s459_s13 = sphi %s488_s13, %s565_s13   ;;  %s455_s12 = sphi %s486_s12, %s564_s12  }
   0x3   : > { %p27_p1 = scmp.ge.s32.totalorder %s25_s15, 2  ;;  %p158_p2 = scmp.lt.s32.totalorder %s463_s14, 3 }
   0x5   : > { %s567_s15 = smov (%p27_p1, %s25_s15), 0  ;;  %p159_p3 = pnand %p405_p0, %p158_p2 }
   0x6   : > { %v220_v0 = vld [vmem:[%s561_s1 + $0x10] sm:$0xff] (!%p159_p3)  ;;  %v218_v1 = vld [vmem:[%s561_s1] sm:$0xff] (!%p159_p3)  ;;  %v465_v2 = vmov (!%p159_p3), 0   ;;  %v221_v3 = vld [vmem:[%s561_s1 + $0x18] sm:$0xff] (!%p159_p3)  ;;  %p191_p4 = scmp.lt.s32.totalorder (!%p159_p3), %s455_s12, 1 }
   0x7   : > { %162 = sbr.rel (%p159_p3) target bundleno = 156 (0x9c), region = 32  ;;  %440 = vset.pattern.permute.xlu1 (!%p159_p3), %v465_v2  ;;  %439 = vset.pattern.permute.xlu0 (!%p159_p3), %v465_v2  ;;  %v219_v4 = vld [vmem:[%s561_s1 + $0x8] sm:$0xff] (!%p159_p3)  ;;  %v250_v6 = vld [vmem:[%s562_s2] sm:$0xff] (!%p159_p3)  ;;  %v253_v7 = vld [vmem:[%s562_s2 + $0x18] sm:$0xff] (!%p159_p3) }
   0x8   : > { %234 = vperm.xlu1 (!%p159_p3), %440, %v220_v0   ;;  %224 = vperm.xlu0 (!%p159_p3), %439, %v218_v1   ;;  %v251_v5 = vld [vmem:[%s562_s2 + $0x8] sm:$0xff] (!%p159_p3)  ;;  %v252_v8 = vld [vmem:[%s562_s2 + $0x10] sm:$0xff] (!%p159_p3) }
   0xc   : > { %239 = vperm.xlu1 (!%p159_p3), %440, %v221_v3   ;;  %229 = vperm.xlu0 (!%p159_p3), %439, %v219_v4  }
   0xe   : > { %s569_s12 = smov (!%p191_p4, %s455_s12), 1 }
   0xf   : > { %s412_s5 = sshll.u32 %s569_s12, 6 }
  0x10   : > { %261 = vperm.xlu1 %440, %v251_v5   ;;  %256 = vperm.xlu0 %439, %v250_v6   ;;  %s198_s8 = scalar_lea.vmem %s560_s0, %s412_s5  ;;  %s541_s11 = scalar_lea.vmem %s563_s3, %s412_s5 }
  0x11   : > { %v210_v11 = vld [vmem:[%s198_s8] sm:$0xff]  ;;  %v211_v12 = vld [vmem:[%s198_s8 + $0x8] sm:$0xff]  ;;  %v212_v15 = vld [vmem:[%s198_s8 + $0x10] sm:$0xff] }
  0x12   : > { %v213_v16 = vld [vmem:[%s198_s8 + $0x18] sm:$0xff]  ;;  %v214_v17 = vld [vmem:[%s198_s8 + $0x20] sm:$0xff]  ;;  %v215_v18 = vld [vmem:[%s198_s8 + $0x28] sm:$0xff] }
  0x13   : > { %v216_v21 = vld [vmem:[%s198_s8 + $0x30] sm:$0xff]  ;;  %v217_v22 = vld [vmem:[%s198_s8 + $0x38] sm:$0xff] }
  0x14   : > { %271 = vperm.xlu1 %440, %v253_v7   ;;  %266 = vperm.xlu0 %439, %v252_v8  }
  0x87   : > { %v235_v9 = vpop.permute.xlu1 %234  ;;  %v225_v10 = vpop.permute.xlu0 %224 }
  0x88   : > { %v242_v19 = vmul.f32 %v225_v10, %v210_v11  ;;  %v243_v20 = vmul.f32 %v225_v10, %v211_v12  ;;  %v246_v31 = vmul.f32 %v235_v9, %v214_v17  ;;  %v247_v32 = vmul.f32 %v235_v9, %v215_v18 }
  0x8b   : > { %v240_v13 = vpop.permute.xlu1 %239  ;;  %v230_v14 = vpop.permute.xlu0 %229 }
  0x8c   : > { %v244_v23 = vmul.f32 %v230_v14, %v212_v15  ;;  %v245_v24 = vmul.f32 %v230_v14, %v213_v16  ;;  %v248_v33 = vmul.f32 %v240_v13, %v216_v21  ;;  %v249_v34 = vmul.f32 %v240_v13, %v217_v22 }
  0x8f   : > { %v262_v25 = vpop.permute.xlu1 %261  ;;  %v257_v26 = vpop.permute.xlu0 %256 }
  0x90   : > { %v276_v27 = vadd.f32 %v262_v25, %v244_v23  ;;  %v277_v28 = vadd.f32 %v262_v25, %v245_v24  ;;  %v274_v29 = vadd.f32 %v257_v26, %v242_v19  ;;  %v275_v30 = vadd.f32 %v257_v26, %v243_v20 }
  0x92   : > { %vm284_vm0 = vcmp.ge.f32.partialorder %v276_v27, 0.0  ;;  %vm285_vm1 = vcmp.ge.f32.partialorder %v277_v28, 0.0  ;;  %v292_v35 = vmul.f32 0.1, %v276_v27  ;;  %v293_v36 = vmul.f32 0.1, %v277_v28 }
  0x93   : > { %vm282_vm2 = vcmp.ge.f32.partialorder %v274_v29, 0.0  ;;  %vm283_vm3 = vcmp.ge.f32.partialorder %v275_v30, 0.0  ;;  %v290_v37 = vmul.f32 0.1, %v274_v29  ;;  %v291_v38 = vmul.f32 0.1, %v275_v30  ;;  %v272_v39 = vpop.permute.xlu1 %271  ;;  %v267_v40 = vpop.permute.xlu0 %266 }
  0x94   : > { %v300_v41 = vsel %vm284_vm0, %v276_v27, %v292_v35  ;;  %v301_v42 = vsel %vm285_vm1, %v277_v28, %v293_v36  ;;  %v280_v43 = vadd.f32 %v272_v39, %v248_v33  ;;  %v281_v44 = vadd.f32 %v272_v39, %v249_v34 }
  0x95   : > { %308 = vst [vmem:[%s541_s11 + $0x10] sm:$0xff] %v300_v41  ;;  %309 = vst [vmem:[%s541_s11 + $0x18] sm:$0xff] %v301_v42  ;;  %v298_v45 = vsel %vm282_vm2, %v274_v29, %v290_v37  ;;  %v299_v46 = vsel %vm283_vm3, %v275_v30, %v291_v38  ;;  %v278_v47 = vadd.f32 %v267_v40, %v246_v31 }
  0x96   : > { %v279_v48 = vadd.f32 %v267_v40, %v247_v32  ;;  %306 = vst [vmem:[%s541_s11] sm:$0xff] %v298_v45  ;;  %307 = vst [vmem:[%s541_s11 + $0x8] sm:$0xff] %v299_v46  ;;  %vm288_vm4 = vcmp.ge.f32.partialorder %v280_v43, 0.0  ;;  %vm289_vm5 = vcmp.ge.f32.partialorder %v281_v44, 0.0  ;;  %v296_v49 = vmul.f32 0.1, %v280_v43 }
  0x97   : > { %v297_v50 = vmul.f32 0.1, %v281_v44  ;;  %vm286_vm6 = vcmp.ge.f32.partialorder %v278_v47, 0.0  ;;  %v294_v51 = vmul.f32 0.1, %v278_v47 }
  0x98   : > { %vm287_vm7 = vcmp.ge.f32.partialorder %v279_v48, 0.0  ;;  %v295_v52 = vmul.f32 0.1, %v279_v48  ;;  %v304_v53 = vsel %vm288_vm4, %v280_v43, %v296_v49 }
  0x99   : > { %v305_v54 = vsel %vm289_vm5, %v281_v44, %v297_v50  ;;  %312 = vst [vmem:[%s541_s11 + $0x30] sm:$0xff] %v304_v53  ;;  %v302_v55 = vsel %vm286_vm6, %v278_v47, %v294_v51 }
  0x9a   : > { %313 = vst [vmem:[%s541_s11 + $0x38] sm:$0xff] %v305_v54  ;;  %v303_v56 = vsel %vm287_vm7, %v279_v48, %v295_v52  ;;  %310 = vst [vmem:[%s541_s11 + $0x20] sm:$0xff] %v302_v55 }
  0x9b   : > { %311 = vst [vmem:[%s541_s11 + $0x28] sm:$0xff] %v303_v56 }
  0x9c PF: > { %s13_s14 = sadd.s32 1, %s463_s14   ;;  %s564_s12 = smov %s459_s13 }
  0x9d   : > { %p10_p5 = scmp.ge.s32.totalorder %s13_s14, 4   ;;  %s565_s13 = smov %s567_s15 }
  0x9f   :  { %12 = sbr.rel (!%p10_p5) target bundleno = 2 (0x2), region = 62 }

</bundles_post_ra>
